<compile_context>
chip_gen: v7x
topology: tpu7x:2x2x1
jax: 0.10.0
libtpu: 0.0.40
codegen_flags: <defaults>
</compile_context>

<pallas_src>
import jax
import jax.numpy as jnp
from jax import lax
from jax.experimental import pallas as pl
from jax.experimental.pallas import tpu as pltpu

INPUT_DIM = 75
OUTPUT_DIM = 6
LN_EPS = 1e-5


def _occlusion_kernel(x_ref, w_ref, b_ref, o_ref):
    # x_ref: (TB, D) batch tile      w_ref: (D, O) gamma-folded weight
    # b_ref: (1, O)  folded bias     o_ref: (TB, O) output tile
    x = x_ref[...].astype(jnp.float32)

    # LayerNorm statistics (affine folded into W/b), biased variance, eps=1e-5.
    mean = jnp.mean(x, axis=-1, keepdims=True)
    centered = x - mean
    var = jnp.mean(centered * centered, axis=-1, keepdims=True)
    inv_std = lax.rsqrt(var + LN_EPS)                       # (TB, 1) -> EUP

    # Linear on the centered rows; per-row scale applied to the small result.
    z = jnp.dot(centered, w_ref[...], preferred_element_type=jnp.float32)
    o_ref[...] = (z * inv_std + b_ref[...]).astype(o_ref.dtype)


def occlusion_classifier(x, gamma, beta, weight, bias, *,
                         tile_b=4096, min_grid_steps=2):
    """Forward pass of OcclusionClassifier.

    x:      (..., D)  any float dtype (f32 or bf16)
    gamma:  (D,)      LayerNorm weight
    beta:   (D,)      LayerNorm bias
    weight: (O, D)    Linear weight (torch layout)
    bias:   (O,)      Linear bias
    returns (..., O) in x.dtype
    """
    orig_shape = x.shape
    D = orig_shape[-1]
    O = weight.shape[0]
    assert weight.shape == (O, D) and gamma.shape == (D,) and beta.shape == (D,)
    x2 = x.reshape(-1, D)
    B = x2.shape[0]
    out_dtype = x.dtype

    # Fold LayerNorm affine into the Linear layer (wrapper-side, f32):
    #   y = (x_hat * gamma + beta) @ W.T + b
    #     = x_hat @ (gamma[:, None] * W.T) + (beta @ W.T + b)
    w_t = weight.T.astype(jnp.float32)                       # (D, O)
    w_folded = gamma.astype(jnp.float32)[:, None] * w_t      # (D, O)
    b_folded = (beta.astype(jnp.float32) @ w_t
                + bias.astype(jnp.float32)).reshape(1, O)

    # Batch tile: large enough to amortise per-step pipeline overhead, small
    # enough to keep a few grid steps for small batches and stay inside VMEM.
    tile_b = max(8, min(tile_b, pl.cdiv(B, min_grid_steps)))
    tile_b = ((tile_b + 7) // 8) * 8                         # sublane multiple

    # Pad batch to a tile multiple (padded rows are harmless, sliced off below).
    n_steps = pl.cdiv(B, tile_b)
    b_pad = n_steps * tile_b
    if b_pad != B:
        x2 = jnp.pad(x2, ((0, b_pad - B), (0, 0)))

    # Advisory cost estimate: HBM-read-bound on x.
    cost = pl.CostEstimate(
        flops=2 * b_pad * D * O + 5 * b_pad * D,
        transcendentals=b_pad,                               # rsqrt per row
        bytes_accessed=(b_pad * D * x2.dtype.itemsize
                        + b_pad * O * jnp.dtype(out_dtype).itemsize
                        + w_folded.size * 4 + b_folded.size * 4),
    )

    out = pl.pallas_call(
        _occlusion_kernel,
        out_shape=jax.ShapeDtypeStruct((b_pad, O), out_dtype),
        grid_spec=pltpu.PrefetchScalarGridSpec(
            num_scalar_prefetch=0,
            grid=(n_steps,),
            in_specs=[
                pl.BlockSpec((tile_b, D), lambda i: (i, 0)),   # x tile
                pl.BlockSpec((D, O), lambda i: (0, 0)),        # folded W (resident)
                pl.BlockSpec((1, O), lambda i: (0, 0)),        # folded b (resident)
            ],
            out_specs=pl.BlockSpec((tile_b, O), lambda i: (i, 0)),
        ),
        compiler_params=pltpu.CompilerParams(
            dimension_semantics=("parallel",),
            vmem_limit_bytes=32 * 1024 * 1024,
        ),
        cost_estimate=cost,
    )(x2, w_folded, b_folded)

    return out[:B].reshape(orig_shape[:-1] + (O,))


def _reference(x, gamma, beta, weight, bias):
    x = x.astype(jnp.float32)
    mean = jnp.mean(x, axis=-1, keepdims=True)
    var = jnp.mean((x - mean) ** 2, axis=-1, keepdims=True)
    x_hat = (x - mean) / jnp.sqrt(var + LN_EPS)
    y = x_hat * gamma.astype(jnp.float32) + beta.astype(jnp.float32)
    return y @ weight.astype(jnp.float32).T + bias.astype(jnp.float32)


if __name__ == "__main__":
    key = jax.random.PRNGKey(0)
    k_x, k_g, k_b, k_w, k_bias, k_x3 = jax.random.split(key, 6)

    # Small demo shapes; batch intentionally NOT a tile multiple to exercise
    # the in-wrapper padding path.
    B = 19
    x = jax.random.normal(k_x, (B, INPUT_DIM), dtype=jnp.float32)

    # Deterministic synthetic parameters (nn.LayerNorm(75) + nn.Linear(75, 6)).
    gamma = 1.0 + 0.1 * jax.random.normal(k_g, (INPUT_DIM,), dtype=jnp.float32)
    beta = 0.1 * jax.random.normal(k_b, (INPUT_DIM,), dtype=jnp.float32)
    weight = 0.1 * jax.random.normal(k_w, (OUTPUT_DIM, INPUT_DIM), dtype=jnp.float32)
    bias = 0.1 * jax.random.normal(k_bias, (OUTPUT_DIM,), dtype=jnp.float32)

    out = jax.block_until_ready(occlusion_classifier(x, gamma, beta, weight, bias))
    ref = _reference(x, gamma, beta, weight, bias)
    assert out.shape == (B, OUTPUT_DIM)
    assert jnp.allclose(out, ref, atol=1e-4, rtol=1e-4), "mismatch vs reference (f32)"

    # 3-D input path (torch module accepts (*, 75)).
    x3 = jax.random.normal(k_x3, (2, 7, INPUT_DIM), dtype=jnp.float32)
    out3 = jax.block_until_ready(occlusion_classifier(x3, gamma, beta, weight, bias))
    ref3 = _reference(x3.reshape(-1, INPUT_DIM), gamma, beta, weight, bias)
    assert out3.shape == (2, 7, OUTPUT_DIM)
    assert jnp.allclose(out3.reshape(-1, OUTPUT_DIM), ref3,
                        atol=1e-4, rtol=1e-4), "mismatch vs reference (3-D)"

    # bf16 input path (halves HBM bytes on the bandwidth-bound read of x).
    x_bf16 = x.astype(jnp.bfloat16)
    out_bf16 = jax.block_until_ready(
        occlusion_classifier(x_bf16, gamma, beta, weight, bias))
    ref_bf16 = _reference(x_bf16.astype(jnp.float32), gamma, beta, weight, bias)
    assert out_bf16.shape == (B, OUTPUT_DIM)
    assert jnp.allclose(out_bf16.astype(jnp.float32), ref_bf16,
                        atol=5e-2, rtol=5e-2), "mismatch vs reference (bf16)"

    print("KERNEL_OK")
</pallas_src>

<mosaic_0001>
module attributes {stable_mosaic.version = 11 : i64} {
  func.func @_occlusion_kernel(%arg0: i32, %arg1: memref<16x75xf32, #tpu.memory_space<vmem>>, %arg2: memref<75x6xf32, #tpu.memory_space<vmem>>, %arg3: memref<1x6xf32, #tpu.memory_space<vmem>>, %arg4: memref<16x6xf32, #tpu.memory_space<vmem>>) attributes {dimension_semantics = [#tpu.dimension_semantics<parallel>], iteration_bounds = array<i64: 2>, scalar_prefetch = 0 : i64, scratch_operands = 0 : i64, tpu.core_type = #tpu.core_type<tc>, window_params = [{transform_indices = @transform_0, window_bounds = array<i64: 16, 75>}, {pipeline_mode = #tpu.pipeline_mode<synchronous>, transform_indices = @transform_1, window_bounds = array<i64: 75, 6>}, {pipeline_mode = #tpu.pipeline_mode<synchronous>, transform_indices = @transform_2, window_bounds = array<i64: 1, 6>}, {transform_indices = @transform_3, window_bounds = array<i64: 16, 6>}]} {
    %c0 = arith.constant 0 : index
    %c0_0 = arith.constant 0 : index
    %0 = vector.load %arg1[%c0, %c0_0] : memref<16x75xf32, #tpu.memory_space<vmem>>, vector<16x75xf32>
    %cst = arith.constant dense<0.000000e+00> : vector<16xf32>
    %1 = vector.multi_reduction <add>, %0, %cst [1] : vector<16x75xf32> to vector<16xf32>
    %2 = vector.shape_cast %1 : vector<16xf32> to vector<16x1xf32>
    %cst_1 = arith.constant 7.500000e+01 : f32
    %3 = vector.broadcast %cst_1 : f32 to vector<16x1xf32>
    %4 = arith.divf %2, %3 : vector<16x1xf32>
    %5 = vector.broadcast %4 : vector<16x1xf32> to vector<16x75xf32>
    %6 = arith.subf %0, %5 : vector<16x75xf32>
    %7 = arith.mulf %6, %6 : vector<16x75xf32>
    %cst_2 = arith.constant dense<0.000000e+00> : vector<16xf32>
    %8 = vector.multi_reduction <add>, %7, %cst_2 [1] : vector<16x75xf32> to vector<16xf32>
    %9 = vector.shape_cast %8 : vector<16xf32> to vector<16x1xf32>
    %cst_3 = arith.constant 7.500000e+01 : f32
    %10 = vector.broadcast %cst_3 : f32 to vector<16x1xf32>
    %11 = arith.divf %9, %10 : vector<16x1xf32>
    %cst_4 = arith.constant 9.99999974E-6 : f32
    %12 = vector.broadcast %cst_4 : f32 to vector<16x1xf32>
    %13 = arith.addf %11, %12 : vector<16x1xf32>
    %14 = math.rsqrt %13 : vector<16x1xf32>
    %c0_5 = arith.constant 0 : index
    %c0_6 = arith.constant 0 : index
    %15 = vector.load %arg2[%c0_5, %c0_6] : memref<75x6xf32, #tpu.memory_space<vmem>>, vector<75x6xf32>
    %cst_7 = arith.constant dense<0.000000e+00> : vector<16x6xf32>
    %16 = tpu.matmul %6, %15, %cst_7 {dimension_numbers = #tpu.dot_dimension_numbers<[1], [0], [0], [1], [0, 0, 1, 1], [], []>} : vector<16x75xf32>, vector<75x6xf32>, vector<16x6xf32> -> vector<16x6xf32>
    %17 = vector.broadcast %14 : vector<16x1xf32> to vector<16x6xf32>
    %18 = arith.mulf %16, %17 : vector<16x6xf32>
    %c0_8 = arith.constant 0 : index
    %c0_9 = arith.constant 0 : index
    %19 = vector.load %arg3[%c0_8, %c0_9] : memref<1x6xf32, #tpu.memory_space<vmem>>, vector<1x6xf32>
    %20 = vector.broadcast %19 : vector<1x6xf32> to vector<16x6xf32>
    %21 = arith.addf %18, %20 : vector<16x6xf32>
    %c0_10 = arith.constant 0 : index
    %c0_11 = arith.constant 0 : index
    %22 = vector.load %arg4[%c0_10, %c0_11] : memref<16x6xf32, #tpu.memory_space<vmem>>, vector<16x6xf32>
    tpu.vector_store %arg4[%c0_10, %c0_11], %21 {strides = array<i32>} : memref<16x6xf32, #tpu.memory_space<vmem>>, vector<16x6xf32>,
    return
  }
  func.func @transform_0(%arg0: i32) -> (i32, i32) {
    %c0_i32 = arith.constant 0 : i32
    %c0_i32_0 = arith.constant 0 : i32
    return %arg0, %c0_i32 : i32, i32
  }
  func.func @transform_1(%arg0: i32) -> (i32, i32) {
    %c0_i32 = arith.constant 0 : i32
    %c0_i32_0 = arith.constant 0 : i32
    %c0_i32_1 = arith.constant 0 : i32
    return %c0_i32, %c0_i32_0 : i32, i32
  }
  func.func @transform_2(%arg0: i32) -> (i32, i32) {
    %c0_i32 = arith.constant 0 : i32
    %c0_i32_0 = arith.constant 0 : i32
    %c0_i32_1 = arith.constant 0 : i32
    return %c0_i32, %c0_i32_0 : i32, i32
  }
  func.func @transform_3(%arg0: i32) -> (i32, i32) {
    %c0_i32 = arith.constant 0 : i32
    %c0_i32_0 = arith.constant 0 : i32
    return %arg0, %c0_i32 : i32, i32
  }
}

</mosaic_0001>

<bundles_post_ra>
// kernel: tpu_custom_call.1
= control target key start
LH: loop header
LB: loop body
LE: loop exit
PB: predicated region body
PF: predicated region fallthrough
CT: control target
= control target key end

     0   :  { %s481_s12 = smov 0   ;;  %s544_s0 = inlined_call_operand.vmem [shape: f32[32,75], index: 0, kind: input, shape index: {}]   ;;  %s545_s1 = inlined_call_operand.vmem [shape: f32[75,6], index: 1, kind: input, shape index: {}]   ;;  %s546_s2 = inlined_call_operand.vmem [shape: f32[1,6], index: 2, kind: input, shape index: {}]   ;;  %s547_s3 = inlined_call_operand.vmem [shape: f32[32,6], index: 3, kind: output, shape index: {}]  }
   0x1 LB: > { %s367_s13 = sadd.s32 4294967295, %s458_s12   ;;  %p371_p0 = scmp.ge.s32.totalorder %s458_s12, 1  ;;  %s458_s12 = sphi %s481_s12, %s13_s12  }
   0x2   : > { %p138_p1 = scmp.lt.s32.totalorder %s458_s12, 3 }
   0x4   : > { %p139_p2 = pnand %p371_p0, %p138_p1 }
   0x5   : > { %s372_s14 = sshll.u32 (!%p139_p2), %s367_s13, 1  ;;  %v202_v0 = vld [vmem:[%s545_s1] sm:$0xff] (!%p139_p2)  ;;  %v203_v1 = vld [vmem:[%s545_s1 + $0x8] sm:$0xff] (!%p139_p2)  ;;  %v204_v2 = vld [vmem:[%s545_s1 + $0x10] sm:$0xff] (!%p139_p2)  ;;  %vm176_vm0 = vcmask (!%p139_p2), 613376   ;;  %vm218_vm1 = vcmask (!%p139_p2), 1042432  }
   0x6   : > { %142 = sbr.rel (%p139_p2) target bundleno = 386 (0x182), region = 32  ;;  %p163_p3 = scmp.lt.s32.totalorder (!%p139_p2), %s372_s14, 3  ;;  %v417_v3 = vpack.c.bf16 (!%p139_p2), %v203_v1, %v202_v0  ;;  %v205_v4 = vld [vmem:[%s545_s1 + $0x18] sm:$0xff] (!%p139_p2)  ;;  %v206_v6 = vld [vmem:[%s545_s1 + $0x20] sm:$0xff] (!%p139_p2)  ;;  %v207_v7 = vld [vmem:[%s545_s1 + $0x28] sm:$0xff] (!%p139_p2)  ;;  %vm460_vm2 = vmmov (!%p139_p2), 1  }
   0x7   : > { %v421_v5 = vpack.c.bf16 (!%p139_p2), %v205_v4, %v204_v2  ;;  %v425_v8 = vpack.c.bf16 (!%p139_p2), %v207_v7, %v206_v6  ;;  %v208_v13 = vld [vmem:[%s545_s1 + $0x30] sm:$0xff] (!%p139_p2)  ;;  %v209_v14 = vld [vmem:[%s545_s1 + $0x38] sm:$0xff] (!%p139_p2)  ;;  %v210_v16 = vld [vmem:[%s545_s1 + $0x40] sm:$0xff] (!%p139_p2)  ;;  %vm308_vm4 = vcmask (!%p139_p2), 48128  }
   0x8   : > { %418 = vmatprep.subr.bf16.mxu0 (!%p139_p2), %v417_v3  ;;  %v429_v15 = vpack.c.bf16 (!%p139_p2), %v209_v14, %v208_v13  ;;  %v211_v17 = vld [vmem:[%s545_s1 + $0x48] sm:$0x7] (!%p139_p2)  ;;  %vm434_vm3 = vmpackc.low (!%p139_p2), %vm218_vm1, %vm460_vm2  ;;  %v379_v39 = vld [vmem:[%s546_s2] ss:$0 sm:$0xff] (!%p139_p2) }
   0x9   : > { %420 = vmatpush3.bf16.msra.mxu0 (!%p139_p2), %v417_v3  ;;  %v433_v18 = vpack.c.bf16 (!%p139_p2), %v211_v17, %v210_v16 }
   0xa   : > { %422 = vmatprep.subr.bf16.mxu0 (!%p139_p2), %v421_v5 }
   0xd   : > { %s549_s14 = smov (!%p163_p3, %s372_s14), 3  ;;  %424 = vmatpush3.bf16.msra.mxu0 %v421_v5 }
   0xe   : > { %s373_s27 = sshll.u32 %s549_s14, 3  ;;  %426 = vmatprep.subr.bf16.mxu0 %v425_v8 }
   0xf   : > { %s166_s30 = scalar_lea.vmem %s544_s0, %s373_s27  ;;  %s172_s18 = scalar_lea.vmem %s547_s3, %s373_s27 }
  0x10   : > { %v174_v9 = vld [vmem:[%s166_s30] sm:$0xff]  ;;  %v175_v10 = vld [vmem:[%s166_s30 + $0x8] sm:$0xff] }
  0x11   : > { %v177_v11 = vsel %vm176_vm0, %v174_v9, 0.0  ;;  %v180_v12 = vsel %vm176_vm0, %v175_v10, 0.0  ;;  %428 = vmatpush3.bf16.msra.mxu0 %v425_v8 }
  0x12   : > { %178 = vadd.xlane.f32.xlu0 %v177_v11  ;;  %430 = vmatprep.subr.bf16.mxu0 %v429_v15 }
  0x15   : > { %432 = vmatpush3.bf16.msra.mxu0 %v429_v15 }
  0x16   : > { %181 = vadd.xlane.f32.xlu0 %v180_v12  ;;  %435 = vmatprep.subr.msk.bf16.mxu0 %vm434_vm3, %v433_v18 }
  0x19   : > { %438 = vmatpush3.bf16.msk.msra.mxu0 %vm434_vm3, %v433_v18 }
  0x9f   : > { %v179_v19 = vpop.xlane.xlu0 %178 }
  0xa0   : > { %v184_v20 = vmul.f32 0.013333334, %v179_v19 }
  0xa2   : > { %v186_v21 = vsub.f32 %v174_v9, %v184_v20 }
  0xa3   : > { %v182_v22 = vpop.xlane.xlu0 %181 }
  0xa4   : > { %v185_v23 = vmul.f32 0.013333334, %v182_v22  ;;  %414 = vmatprep.mubr.msk.f32.mxu0 %vm176_vm0, %v186_v21  ;;  %v188_v24 = vmul.f32 %v186_v21, %v186_v21 }
  0xa6   : > { %v187_v25 = vsub.f32 %v175_v10, %v185_v23  ;;  %v190_v26 = vsel %vm176_vm0, %v188_v24, 0.0 }
  0xa7   : > { %191 = vadd.xlane.f32.xlu1 %v190_v26 }
  0xa8   : > { %415 = vmatmul.mubr.msk.f32.vlgmr.msra.gmra.mrb[0].mxu0 %vm176_vm0, %v187_v25  ;;  %v189_v27 = vmul.f32 %v187_v25, %v187_v25 }
  0xaa   : > { %v193_v28 = vsel %vm176_vm0, %v189_v27, 0.0 }
  0xab   : > { %194 = vadd.xlane.f32.xlu1 %v193_v28 }
 0x134   : > { %v192_v29 = vpop.xlane.xlu1 %191 }
 0x135   : > { %v196_v32 = vmul.f32 0.013333334, %v192_v29 }
 0x137   : > { %v198_v34 = vadd.f32 1e-05, %v196_v32 }
 0x138   : > { %v195_v30 = vpop.xlane.xlu1 %194 }
 0x139   : > { %v197_v31 = vmul.f32 0.013333334, %v195_v30 }
 0x13b   : > { %v199_v33 = vadd.f32 1e-05, %v197_v31 }
 0x13d   : > { %448 = vrsqrt.f32 %v199_v33 }
 0x13e   : > { %450 = vrsqrt.f32 %v198_v34 }
 0x147   : > { %v449_v35 = vpop.eup %448 }
 0x148   : > { %v451_v37 = vpop.eup %450 }
 0x17b   : > { %v416_v36 = vpop.f32.mrb[0].mxu0 }
 0x17c   : > { %v298_v38 = vmul.f32 %v449_v35, %v416_v36  ;;  %v288_v40 = vpop.f32.mrb[1].mxu0 }
 0x17d   : > { %v297_v41 = vmul.f32 %v451_v37, %v288_v40 }
 0x17e   : > { %v307_v43 = vadd.f32 %v379_v39, %v298_v38 }
 0x17f   : > { %v306_v42 = vadd.f32 %v379_v39, %v297_v41 }
 0x180   : > { %310 = vst.msk [vmem:[%s172_s18 + $0x8] sm:$0xff] %vm308_vm4, %v307_v43 }
 0x181   : > { %309 = vst.msk [vmem:[%s172_s18] sm:$0xff] %vm308_vm4, %v306_v42 }
 0x182 PF: > { %s13_s12 = sadd.s32 1, %s458_s12  }
 0x183   : > { %p10_p4 = scmp.ge.s32.totalorder %s13_s12, 4  }
 0x185   :  { %12 = sbr.rel (!%p10_p4) target bundleno = 1 (0x1), region = 62 }

</bundles_post_ra>
